<compile_context>
chip_gen: v5e
topology: v5e:2x2
jax: 0.10.0
libtpu: 0.0.40
codegen_flags: <defaults>
</compile_context>

<pallas_src>
import jax
import jax.numpy as jnp
from jax.experimental import pallas as pl
from jax.experimental.pallas import tpu as pltpu


# ------------------------------ kernel body ------------------------------ #

def _add_one_kernel(x_ref, o_ref):
    o_ref[...] = x_ref[...] + jnp.asarray(1, dtype=o_ref.dtype)


# ------------------------------ heuristics ------------------------------- #

_MAX_LANE_COLS = 4096  # widest lane-dense flattening width we consider


def _cdiv(a: int, b: int) -> int:
    return -(-a // b)


def _round_down(a: int, m: int) -> int:
    return (a // m) * m


def _round_up(a: int, m: int) -> int:
    return _cdiv(a, m) * m


def _device_kind() -> str:
    try:
        return jax.devices()[0].device_kind.lower()
    except Exception:  # pragma: no cover - non-TPU / odd backends
        return ""


def _is_multi_tc(kind: str) -> bool:
    # v7x has 2 TensorCores per chip; v5e/v6e have 1.
    return ("v7" in kind) or ("tpu7" in kind)


def _min_pallas_bytes(kind: str) -> int:
    # Below this, plain XLA elementwise add wins (launch / pipeline-fill cost).
    return (4 << 20) if _is_multi_tc(kind) else (1 << 20)


def _target_block_bytes(kind: str) -> int:
    # v5e/v6e: 128 MiB VMEM -> ride the top of the tile-size curve (~4 MiB).
    # v7x: 64 MiB VMEM -> keep ~2 MiB so in+out double-buffered stays small.
    return (2 << 20) if _is_multi_tc(kind) else (4 << 20)


def _pick_lane_dense_cols(total: int) -> int | None:
    """Largest multiple of 128 (<= _MAX_LANE_COLS) that divides `total`."""
    if total % 128 != 0:
        return None
    c = min(_MAX_LANE_COLS, _round_down(total, 128))
    while c >= 128:
        if total % c == 0:
            return c
        c -= 128
    return None


def _pick_tile_rows(rows: int, cols: int, itemsize: int, sub: int,
                    multi_tc: bool, target_block_bytes: int) -> int:
    if rows <= sub:
        return rows  # full-dim block (legal via the "equals full array dim" rule)

    row_bytes = cols * itemsize
    # Largest sublane-multiple tile that stays within the per-block target.
    t = max(sub, _round_down(target_block_bytes // row_bytes, sub))
    tile = min(t, _round_down(rows, sub))

    if multi_tc:
        min_block_bytes = 1 << 20  # never shrink below ~1 MiB just for evenness
        nblk = _cdiv(rows, tile)
        if nblk == 1:
            half = max(sub, _round_up(_cdiv(rows, 2), sub))
            if half < rows and half * row_bytes >= min_block_bytes:
                tile = half
        elif nblk % 2 == 1:
            cand = max(sub, _round_up(_cdiv(rows, nblk + 1), sub))
            if (cand * row_bytes >= min_block_bytes
                    and _cdiv(rows, cand) % 2 == 0):
                tile = cand
    return tile


# ------------------------------ public wrapper --------------------------- #

def add_one(x: jax.Array, *, force_pallas: bool = False,
            donate: bool = False) -> jax.Array:
    """Elementwise x + 1; Pallas TPU kernel for large inputs, XLA otherwise.

    donate=True adds input_output_aliases={0: 0} (only use when the caller
    actually donates x, e.g. via jit donate_argnums); saves one HBM buffer.
    """
    one = jnp.asarray(1, dtype=x.dtype)

    total = x.size
    if total == 0:
        return x + one

    kind = _device_kind()
    itemsize = jnp.dtype(x.dtype).itemsize
    nbytes = total * itemsize

    if not force_pallas and nbytes < _min_pallas_bytes(kind):
        # Launch/pipeline-fill dominated regime: let XLA fuse the add.
        return x + one

    cols = _pick_lane_dense_cols(total)
    if cols is None:
        # Lane-dense flattening impossible without padding (total % 128 != 0);
        # padding would add full extra HBM passes, so fall back to XLA.
        return x + one

    rows = total // cols
    x2 = x.reshape(rows, cols)  # metadata-only for default row-major layout

    # Sublane multiple for this dtype (f32: 8, bf16: 16, int8: 32).
    sub = max(8, 32 // itemsize)

    tile_rows = _pick_tile_rows(rows, cols, itemsize, sub,
                                _is_multi_tc(kind), _target_block_bytes(kind))
    grid = (_cdiv(rows, tile_rows),)

    out2 = pl.pallas_call(
        _add_one_kernel,
        out_shape=jax.ShapeDtypeStruct((rows, cols), x.dtype),
        grid_spec=pltpu.PrefetchScalarGridSpec(
            num_scalar_prefetch=0,
            grid=grid,
            in_specs=[pl.BlockSpec((tile_rows, cols), lambda i: (i, 0))],
            out_specs=pl.BlockSpec((tile_rows, cols), lambda i: (i, 0)),
        ),
        compiler_params=pltpu.CompilerParams(
            dimension_semantics=("parallel",),
            vmem_limit_bytes=32 * 1024 * 1024,
        ),
        input_output_aliases=({0: 0} if donate else {}),
    )(x2)

    return out2.reshape(x.shape)


# ------------------------------ demo / test ------------------------------ #

if __name__ == "__main__":
    k0, k1, k2 = jax.random.split(jax.random.PRNGKey(0), 3)

    # Small NCHW input consistent with the module's forward (input + 1).
    x_small = jax.random.normal(k0, (2, 4, 16, 16), dtype=jnp.float32)
    # Medium input (2 MiB): lane-dense single/dual-block path via force_pallas.
    x_med = jax.random.normal(k1, (16, 8, 32, 128), dtype=jnp.float32)
    # Larger input (8 MiB): default heuristics take the multi-block Pallas path
    # on every generation (2 blocks on v5e/v6e, 4 even blocks on v7x).
    x_large = jax.random.normal(k2, (32, 8, 64, 128), dtype=jnp.float32)

    y_small_default = add_one(x_small)                    # heuristic (XLA fallback)
    y_small_pallas = add_one(x_small, force_pallas=True)  # Pallas kernel, 1 block
    y_med = add_one(x_med, force_pallas=True)             # Pallas kernel
    y_large = add_one(x_large)                            # Pallas kernel, multi-block

    jax.block_until_ready((y_small_default, y_small_pallas, y_med, y_large))

    assert jnp.allclose(y_small_default, x_small + 1.0, atol=1e-6)
    assert jnp.allclose(y_small_pallas, x_small + 1.0, atol=1e-6)
    assert jnp.allclose(y_med, x_med + 1.0, atol=1e-6)
    assert jnp.allclose(y_large, x_large + 1.0, atol=1e-6)

    print("KERNEL_OK")
</pallas_src>

<mosaic_0001>
module attributes {stable_mosaic.version = 11 : i64} {
  func.func @_add_one_kernel(%arg0: i32, %arg1: memref<1x2048xf32, #tpu.memory_space<vmem>>, %arg2: memref<1x2048xf32, #tpu.memory_space<vmem>>) attributes {dimension_semantics = [#tpu.dimension_semantics<parallel>], iteration_bounds = array<i64: 1>, scalar_prefetch = 0 : i64, scratch_operands = 0 : i64, tpu.core_type = #tpu.core_type<tc>, window_params = [{transform_indices = @transform_0, window_bounds = array<i64: 1, 2048>}, {transform_indices = @transform_1, window_bounds = array<i64: 1, 2048>}]} {
    %c0 = arith.constant 0 : index
    %c0_0 = arith.constant 0 : index
    %0 = vector.load %arg1[%c0, %c0_0] : memref<1x2048xf32, #tpu.memory_space<vmem>>, vector<1x2048xf32>
    %cst = arith.constant 1.000000e+00 : f32
    %1 = vector.broadcast %cst : f32 to vector<1x2048xf32>
    %2 = arith.addf %0, %1 : vector<1x2048xf32>
    %c0_1 = arith.constant 0 : index
    %c0_2 = arith.constant 0 : index
    %3 = vector.load %arg2[%c0_1, %c0_2] : memref<1x2048xf32, #tpu.memory_space<vmem>>, vector<1x2048xf32>
    tpu.vector_store %arg2[%c0_1, %c0_2], %2 {strides = array<i32>} : memref<1x2048xf32, #tpu.memory_space<vmem>>, vector<1x2048xf32>,
    return
  }
  func.func @transform_0(%arg0: i32) -> (i32, i32) {
    %c0_i32 = arith.constant 0 : i32
    %c0_i32_0 = arith.constant 0 : i32
    return %arg0, %c0_i32 : i32, i32
  }
  func.func @transform_1(%arg0: i32) -> (i32, i32) {
    %c0_i32 = arith.constant 0 : i32
    %c0_i32_0 = arith.constant 0 : i32
    return %arg0, %c0_i32 : i32, i32
  }
}

</mosaic_0001>

<bundles_post_ra>
// kernel: tpu_custom_call.1
= control target key start
LH: loop header
LB: loop body
LE: loop exit
PB: predicated region body
PF: predicated region fallthrough
CT: control target
= control target key end

     0   :  { %6 = vsyncpa [#allocation3], 0  ;;  %s118_s0 = inlined_call_operand.hbm [shape: f32[1,2048], index: 0, kind: input, shape index: {}]   ;;  %s119_s1 = inlined_call_operand.hbm [shape: f32[1,2048], index: 1, kind: output, shape index: {}]  }
   0x1   :  { %7 = vsyncpa [#allocation4], 0  ;;  %s13_s8 = sshll.u32 %s118_s0, 4  ;;  %s100_s9 = smov [#allocation2]   ;;  %s14_s8 = int_to_ptr.hbm [resolvable:$true] %s13_s8 }
   0x2   :  { %s15_s10 = sshll.u32 %s100_s9, 4  ;;  %s16_s10 = int_to_ptr.vmem [resolvable:$true] %s15_s10 }
   0x3   :  { %18 = dma.hbm_to_vmem [thread:$0]  %s14_s8, 256, %s16_s10, [#allocation3]  }
   0x4   :  { %96 = dma.done.wait [#allocation3], 256  }
   0x5   :  { %97 = vsyncadd [#allocation3], 4294967040  ;;  %s101_s11 = smov [#allocation5]   ;;  %s36_s15 = sshll.u32 %s119_s1, 4  ;;  %v23_v0 = vld [vmem:[#allocation2] sm:$0xff]  ;;  %v24_v1 = vld [vmem:[#allocation2 + $0x8] sm:$0xff]  ;;  %s37_s15 = int_to_ptr.hbm [resolvable:$true] %s36_s15 }
   0x6   :  { %s34_s12 = sshll.u32 %s101_s11, 4  ;;  %v25_v2 = vadd.f32 1.0, %v23_v0  ;;  %v26_v3 = vadd.f32 1.0, %v24_v1  ;;  %s35_s12 = int_to_ptr.vmem [resolvable:$true] %s34_s12 }
   0x8   :  { %27 = vst [vmem:[#allocation5] sm:$0xff] %v25_v2 }
   0x9   :  { %28 = vst [vmem:[#allocation5 + $0x8] sm:$0xff] %v26_v3 }
   0xa   :  { %39 = dma.vmem_to_hbm [thread:$0]  %s35_s12, 256, %s37_s15, [#allocation4]  }
   0xb   :  { %98 = dma.done.wait [#allocation4], 256  }
   0xc   :  { %99 = vsyncadd [#allocation4], 4294967040 }
   0xd   :  { %44 = vsyncpa [#allocation3], 1 }
   0xe   :  { %45 = vsyncpa [#allocation4], 1 }

</bundles_post_ra>
